<compile_context>
chip_gen: v7x
topology: tpu7x:2x2x1
jax: 0.10.0
libtpu: 0.0.40
codegen_flags: <defaults>
</compile_context>

<pallas_src>
import functools

import jax
import jax.numpy as jnp
from jax import lax
from jax.experimental import pallas as pl
from jax.experimental.pallas import tpu as pltpu


def _dot_attention_kernel(q_ref, ctx_ref, w_ref, out_ref, wts_ref, *,
                          compute_dtype, flat_out, flat_wts):
    # q_ref  : (BB, TQ, D)        query tile for this grid step
    # ctx_ref: (BB, C,  D)        full context rows for the same BB batch elements
    # w_ref  : (D, D)             linear_in weight, PyTorch layout (y = x @ W^T)
    # out_ref: (BB, TQ, D)  or (BB, 1, TQ*D) when flat_out
    # wts_ref: (BB, TQ, C)  or (BB, 1, TQ*C) when flat_wts
    bb, tq, d = q_ref.shape
    c = ctx_ref.shape[1]

    q = q_ref[...].astype(compute_dtype)         # (BB, TQ, D)
    ctx = ctx_ref[...].astype(compute_dtype)     # (BB, C,  D)
    w = w_ref[...].astype(compute_dtype)         # (D, D)

    # general attention: q_proj = q @ W^T as a single flattened NT matmul
    # ((BB*TQ, D) x (D, D), contraction on the last axes, f32 accumulation).
    q2 = q.reshape(bb * tq, d)
    q_proj = lax.dot_general(
        q2, w, dimension_numbers=(((1,), (1,)), ((), ())),
        preferred_element_type=jnp.float32).astype(compute_dtype).reshape(bb, tq, d)

    # scores = q_proj @ context^T  (batched NT contraction on the MXU, f32 accumulation)
    scores = jnp.einsum("bqd,bcd->bqc", q_proj, ctx,
                        preferred_element_type=jnp.float32)              # (BB, TQ, C)

    # numerically-stable softmax over the context axis (== torch.nn.Softmax(dim=-1))
    m = jnp.max(scores, axis=-1, keepdims=True)
    e = jnp.exp(scores - m)
    denom = jnp.sum(e, axis=-1, keepdims=True)
    if jnp.dtype(compute_dtype) == jnp.dtype(jnp.float32):
        weights = e / denom                                              # exact
    else:
        weights = e * pl.reciprocal(denom, approx=True)                  # EUP slot

    # out = weights @ context  (f32 accumulation)
    out = jnp.einsum("bqc,bcd->bqd", weights.astype(compute_dtype), ctx,
                     preferred_element_type=jnp.float32)                 # (BB, TQ, D)

    if flat_out:
        out_ref[...] = out.reshape(bb, 1, tq * d).astype(out_ref.dtype)
    else:
        out_ref[...] = out.astype(out_ref.dtype)
    if flat_wts:
        wts_ref[...] = weights.reshape(bb, 1, tq * c).astype(wts_ref.dtype)
    else:
        wts_ref[...] = weights.astype(wts_ref.dtype)


def _pick_tile(n, cap, align):
    """Largest divisor of n that is <= cap and a multiple of `align`; else n (full dim)."""
    for d in range(min(n, cap), 0, -1):
        if n % d == 0 and d % align == 0:
            return d
    return n


def _vmem_capacity_bytes():
    try:
        return int(pltpu.get_tpu_info().vmem_capacity_bytes)
    except Exception:
        return 64 * 1024 * 1024  # conservative (v7x-sized) fallback


def dot_attention(query, context, w_in, *, block_b=None, block_q=None,
                  compute_dtype=jnp.bfloat16, weights_dtype=jnp.float32,
                  vmem_limit_bytes=None):
    """query: (bs, Q, D), context: (bs, C, D), w_in: (D, D) (PyTorch nn.Linear layout).

    Returns (out (bs, Q, D) in query.dtype, weights (bs, Q, C) in weights_dtype)."""
    bs, Q, D = query.shape
    bs_c, C, D_c = context.shape
    assert bs_c == bs and D_c == D and w_in.shape == (D, D)

    vmem_cap = _vmem_capacity_bytes()
    if vmem_limit_bytes is None:
        # Leave headroom: 64 MiB is the *entire* physical VMEM on v7x.
        vmem_limit_bytes = int(vmem_cap * 3 // 4)

    # 512-wide Q tiles on 128-MiB chips (v5e/v6e), 256 on smaller-VMEM chips (v7x).
    q_cap = 512 if vmem_cap >= 100 * 1024 * 1024 else 256
    if block_q is None:
        # sublane-aligned Q tile (full Q is exempt from the (8,128) rule if it falls back)
        block_q = _pick_tile(Q, q_cap, 8)
    if block_b is None:
        if block_q == Q and Q < 128:
            # tiny-shape regime: pack several batch elements per grid step, but keep at
            # least 2 parallel grid steps so both TensorCores are used on v7x.
            cap = max(1, 128 // Q)
            if bs >= 2:
                cap = min(cap, max(1, bs // 2))
            block_b = _pick_tile(bs, cap, 1)
        else:
            block_b = 1
    assert Q % block_q == 0 and bs % block_b == 0

    grid = (bs // block_b, Q // block_q)

    # Lane-dense output slabs in the tiny-shape regime (masked vst.msk -> unmasked vst).
    flat_out = (block_q == Q) and (D < 128)
    flat_wts = (block_q == Q) and (C < 128)

    out_shapes = []
    out_specs = []
    if flat_out:
        out_shapes.append(jax.ShapeDtypeStruct((bs, 1, Q * D), query.dtype))
        out_specs.append(pl.BlockSpec((block_b, 1, Q * D), lambda b, qi: (b, 0, 0)))
    else:
        out_shapes.append(jax.ShapeDtypeStruct((bs, Q, D), query.dtype))
        out_specs.append(pl.BlockSpec((block_b, block_q, D), lambda b, qi: (b, qi, 0)))
    if flat_wts:
        out_shapes.append(jax.ShapeDtypeStruct((bs, 1, Q * C), weights_dtype))
        out_specs.append(pl.BlockSpec((block_b, 1, Q * C), lambda b, qi: (b, 0, 0)))
    else:
        out_shapes.append(jax.ShapeDtypeStruct((bs, Q, C), weights_dtype))
        out_specs.append(pl.BlockSpec((block_b, block_q, C), lambda b, qi: (b, qi, 0)))

    grid_spec = pltpu.PrefetchScalarGridSpec(
        num_scalar_prefetch=0,
        grid=grid,
        in_specs=[
            pl.BlockSpec((block_b, block_q, D), lambda b, qi: (b, qi, 0)),
            # context: constant along the inner Q-tile axis -> DMA'd once per batch block
            pl.BlockSpec((block_b, C, D), lambda b, qi: (b, 0, 0)),
            # weight: grid-invariant index map -> not re-DMA'd in steady state
            pl.BlockSpec((D, D), lambda b, qi: (0, 0)),
        ],
        out_specs=out_specs,
    )

    # Advisory cost estimate so XLA can overlap surrounding ops with the kernel.
    q_bytes = bs * Q * D * jnp.dtype(query.dtype).itemsize
    c_bytes = bs * C * D * jnp.dtype(context.dtype).itemsize
    w_bytes = D * D * jnp.dtype(w_in.dtype).itemsize
    o_bytes = bs * Q * D * jnp.dtype(query.dtype).itemsize
    a_bytes = bs * Q * C * jnp.dtype(weights_dtype).itemsize
    cost = pl.CostEstimate(
        flops=2 * bs * Q * D * D + 4 * bs * Q * C * D,
        transcendentals=bs * Q * C,
        bytes_accessed=q_bytes + c_bytes + w_bytes + o_bytes + a_bytes,
    )

    kernel = functools.partial(_dot_attention_kernel, compute_dtype=compute_dtype,
                               flat_out=flat_out, flat_wts=flat_wts)

    out, wts = pl.pallas_call(
        kernel,
        out_shape=tuple(out_shapes),
        grid_spec=grid_spec,
        compiler_params=pltpu.CompilerParams(
            dimension_semantics=("parallel", "parallel"),
            vmem_limit_bytes=vmem_limit_bytes,
        ),
        cost_estimate=cost,
    )(query, context, w_in)

    if flat_out:
        out = out.reshape(bs, Q, D)
    if flat_wts:
        wts = wts.reshape(bs, Q, C)
    return out, wts


def dot_attention_ref(query, context, w_in, compute_dtype=jnp.float32):
    """Pure-JAX reference mirroring the PyTorch forward (general, fuse_query=False).

    compute_dtype lets us build a bf16-matched reference for the fast MXU path."""
    q = query.astype(compute_dtype)
    ctx = context.astype(compute_dtype)
    w = w_in.astype(compute_dtype)
    q_proj = jnp.einsum("bqd,ed->bqe", q, w,
                        preferred_element_type=jnp.float32).astype(compute_dtype)
    scores = jnp.einsum("bqd,bcd->bqc", q_proj, ctx,
                        preferred_element_type=jnp.float32)
    weights = jax.nn.softmax(scores, axis=-1)
    out = jnp.einsum("bqc,bcd->bqd", weights.astype(compute_dtype), ctx,
                     preferred_element_type=jnp.float32)
    return out.astype(query.dtype), weights


if __name__ == "__main__":
    key = jax.random.PRNGKey(0)
    bs, query_num, context_num, dim = 2, 8, 8, 32

    k_q, k_c, k_w = jax.random.split(key, 3)
    query = jax.random.normal(k_q, (bs, query_num, dim), dtype=jnp.float32)
    context = jax.random.normal(k_c, (bs, context_num, dim), dtype=jnp.float32)
    # nn.Linear(dim, dim, bias=False) weight, deterministic init
    w_in = (jax.random.uniform(k_w, (dim, dim), dtype=jnp.float32) - 0.5) * (2.0 / jnp.sqrt(dim))

    # Full-precision path: exact softmax division, compared against the exact f32 reference.
    out32, wts32 = dot_attention(query, context, w_in, compute_dtype=jnp.float32)
    out32 = jax.block_until_ready(out32)
    wts32 = jax.block_until_ready(wts32)
    out_ref, wts_ref = dot_attention_ref(query, context, w_in)
    assert jnp.allclose(out32, out_ref, atol=1e-4, rtol=1e-4)
    assert jnp.allclose(wts32, wts_ref, atol=1e-4, rtol=1e-4)

    # Default fast path (bf16 MXU inputs, f32 accumulation): compared against a
    # bf16-matched reference (bf16 inputs introduce ~1e-2 relative error vs exact f32).
    outbf, wtsbf = dot_attention(query, context, w_in)
    outbf = jax.block_until_ready(outbf)
    wtsbf = jax.block_until_ready(wtsbf)
    out_ref_bf, wts_ref_bf = dot_attention_ref(query, context, w_in,
                                               compute_dtype=jnp.bfloat16)
    assert jnp.allclose(outbf, out_ref_bf, atol=2e-2, rtol=2e-2)
    assert jnp.allclose(wtsbf, wts_ref_bf, atol=2e-2, rtol=2e-2)

    print("KERNEL_OK")
</pallas_src>

<mosaic_0001>
module attributes {stable_mosaic.version = 11 : i64} {
  func.func @_dot_attention_kernel(%arg0: i32, %arg1: i32, %arg2: memref<1x8x32xf32, #tpu.memory_space<vmem>>, %arg3: memref<1x8x32xf32, #tpu.memory_space<vmem>>, %arg4: memref<32x32xf32, #tpu.memory_space<vmem>>, %arg5: memref<1x1x256xf32, #tpu.memory_space<vmem>>, %arg6: memref<1x1x64xf32, #tpu.memory_space<vmem>>) attributes {dimension_semantics = [#tpu.dimension_semantics<parallel>, #tpu.dimension_semantics<parallel>], iteration_bounds = array<i64: 2, 1>, scalar_prefetch = 0 : i64, scratch_operands = 0 : i64, tpu.core_type = #tpu.core_type<tc>, window_params = [{transform_indices = @transform_0, window_bounds = array<i64: 1, 8, 32>}, {transform_indices = @transform_1, window_bounds = array<i64: 1, 8, 32>}, {pipeline_mode = #tpu.pipeline_mode<synchronous>, transform_indices = @transform_2, window_bounds = array<i64: 32, 32>}, {transform_indices = @transform_3, window_bounds = array<i64: 1, 1, 256>}, {transform_indices = @transform_4, window_bounds = array<i64: 1, 1, 64>}]} {
    %c0 = arith.constant 0 : index
    %c0_0 = arith.constant 0 : index
    %c0_1 = arith.constant 0 : index
    %0 = vector.load %arg2[%c0, %c0_0, %c0_1] : memref<1x8x32xf32, #tpu.memory_space<vmem>>, vector<1x8x32xf32>
    %c0_2 = arith.constant 0 : index
    %c0_3 = arith.constant 0 : index
    %c0_4 = arith.constant 0 : index
    %1 = vector.load %arg3[%c0_2, %c0_3, %c0_4] : memref<1x8x32xf32, #tpu.memory_space<vmem>>, vector<1x8x32xf32>
    %c0_5 = arith.constant 0 : index
    %c0_6 = arith.constant 0 : index
    %2 = vector.load %arg4[%c0_5, %c0_6] : memref<32x32xf32, #tpu.memory_space<vmem>>, vector<32x32xf32>
    %3 = vector.shape_cast %0 : vector<1x8x32xf32> to vector<8x32xf32>
    %cst = arith.constant dense<0.000000e+00> : vector<8x32xf32>
    %4 = tpu.matmul %3, %2, %cst {dimension_numbers = #tpu.dot_dimension_numbers<[1], [1], [0], [0], [0, 0, 1, 0], [], []>} : vector<8x32xf32>, vector<32x32xf32>, vector<8x32xf32> -> vector<8x32xf32>
    %5 = vector.shape_cast %4 : vector<8x32xf32> to vector<1x8x32xf32>
    "tpu.trace_start"() <{level = 10 : i32, message = "bqd,bcd->bqc"}> : () -> ()
    %cst_7 = arith.constant dense<0.000000e+00> : vector<1x8x8xf32>
    %6 = tpu.matmul %5, %1, %cst_7 {dimension_numbers = #tpu.dot_dimension_numbers<[2], [2], [1], [1], [0, 0, 0, 1, 1, 1], [0], [0]>} : vector<1x8x32xf32>, vector<1x8x32xf32>, vector<1x8x8xf32> -> vector<1x8x8xf32>
    "tpu.trace_stop"() : () -> ()
    %cst_8 = arith.constant dense<0xFF800000> : vector<1x8xf32>
    %7 = vector.multi_reduction <maximumf>, %6, %cst_8 [2] : vector<1x8x8xf32> to vector<1x8xf32>
    %8 = vector.shape_cast %7 : vector<1x8xf32> to vector<1x8x1xf32>
    %9 = vector.broadcast %8 : vector<1x8x1xf32> to vector<1x8x8xf32>
    %10 = arith.subf %6, %9 : vector<1x8x8xf32>
    %11 = math.exp %10 : vector<1x8x8xf32>
    %cst_9 = arith.constant dense<0.000000e+00> : vector<1x8xf32>
    %12 = vector.multi_reduction <add>, %11, %cst_9 [2] : vector<1x8x8xf32> to vector<1x8xf32>
    %13 = vector.shape_cast %12 : vector<1x8xf32> to vector<1x8x1xf32>
    %14 = vector.broadcast %13 : vector<1x8x1xf32> to vector<1x8x8xf32>
    %15 = arith.divf %11, %14 : vector<1x8x8xf32>
    "tpu.trace_start"() <{level = 10 : i32, message = "bqc,bcd->bqd"}> : () -> ()
    %cst_10 = arith.constant dense<0.000000e+00> : vector<1x8x32xf32>
    %16 = tpu.matmul %15, %1, %cst_10 {dimension_numbers = #tpu.dot_dimension_numbers<[2], [1], [1], [2], [0, 0, 0, 1, 1, 2], [0], [0]>} : vector<1x8x8xf32>, vector<1x8x32xf32>, vector<1x8x32xf32> -> vector<1x8x32xf32>
    "tpu.trace_stop"() : () -> ()
    %17 = vector.shape_cast %16 : vector<1x8x32xf32> to vector<1x1x256xf32>
    %c0_11 = arith.constant 0 : index
    %c0_12 = arith.constant 0 : index
    %c0_13 = arith.constant 0 : index
    %18 = vector.load %arg5[%c0_11, %c0_12, %c0_13] : memref<1x1x256xf32, #tpu.memory_space<vmem>>, vector<1x1x256xf32>
    tpu.vector_store %arg5[%c0_11, %c0_12, %c0_13], %17 {strides = array<i32>} : memref<1x1x256xf32, #tpu.memory_space<vmem>>, vector<1x1x256xf32>,
    %19 = vector.shape_cast %15 : vector<1x8x8xf32> to vector<1x1x64xf32>
    %c0_14 = arith.constant 0 : index
    %c0_15 = arith.constant 0 : index
    %c0_16 = arith.constant 0 : index
    %20 = vector.load %arg6[%c0_14, %c0_15, %c0_16] : memref<1x1x64xf32, #tpu.memory_space<vmem>>, vector<1x1x64xf32>
    tpu.vector_store %arg6[%c0_14, %c0_15, %c0_16], %19 {strides = array<i32>} : memref<1x1x64xf32, #tpu.memory_space<vmem>>, vector<1x1x64xf32>,
    return
  }
  func.func @transform_0(%arg0: i32, %arg1: i32) -> (i32, i32, i32) {
    %c0_i32 = arith.constant 0 : i32
    %c0_i32_0 = arith.constant 0 : i32
    return %arg0, %arg1, %c0_i32 : i32, i32, i32
  }
  func.func @transform_1(%arg0: i32, %arg1: i32) -> (i32, i32, i32) {
    %c0_i32 = arith.constant 0 : i32
    %c0_i32_0 = arith.constant 0 : i32
    %c0_i32_1 = arith.constant 0 : i32
    return %arg0, %c0_i32, %c0_i32_0 : i32, i32, i32
  }
  func.func @transform_2(%arg0: i32, %arg1: i32) -> (i32, i32) {
    %c0_i32 = arith.constant 0 : i32
    %c0_i32_0 = arith.constant 0 : i32
    %c0_i32_1 = arith.constant 0 : i32
    return %c0_i32, %c0_i32_0 : i32, i32
  }
  func.func @transform_3(%arg0: i32, %arg1: i32) -> (i32, i32, i32) {
    %c0_i32 = arith.constant 0 : i32
    %c0_i32_0 = arith.constant 0 : i32
    %c0_i32_1 = arith.constant 0 : i32
    return %arg0, %c0_i32, %c0_i32_0 : i32, i32, i32
  }
  func.func @transform_4(%arg0: i32, %arg1: i32) -> (i32, i32, i32) {
    %c0_i32 = arith.constant 0 : i32
    %c0_i32_0 = arith.constant 0 : i32
    %c0_i32_1 = arith.constant 0 : i32
    return %arg0, %c0_i32, %c0_i32_0 : i32, i32, i32
  }
}

</mosaic_0001>

<bundles_post_ra>
// kernel: tpu_custom_call.1
= control target key start
LH: loop header
LB: loop body
LE: loop exit
PB: predicated region body
PF: predicated region fallthrough
CT: control target
= control target key end

     0   :  { %s1666_s0 = inlined_call_operand.hbm [shape: f32[2,8,32], index: 0, kind: input, shape index: {}]   ;;  %s1667_s1 = inlined_call_operand.hbm [shape: f32[2,8,32], index: 1, kind: input, shape index: {}]   ;;  %s1668_s2 = inlined_call_operand.hbm [shape: f32[32,32], index: 2, kind: input, shape index: {}]   ;;  %s1669_s3 = inlined_call_operand.hbm [shape: f32[2,1,256], index: 3, kind: output, shape index: {0}]   ;;  %s1670_s4 = inlined_call_operand.hbm [shape: f32[2,1,64], index: 4, kind: output, shape index: {1}]  }
   0x1   :  { %1677 = sst [smem:[#allocation18_spill]] %s1668_s2 }
   0x2   :  { %10 = vsyncpa [#allocation3], 0 }
   0x3   :  { %12 = vsyncpa [#allocation3 + $0x1], 0 }
   0x4   :  { %13 = vsyncpa [#allocation6], 0 }
   0x5   :  { %15 = vsyncpa [#allocation6 + $0x1], 0 }
   0x6   :  { %16 = vsyncpa [#allocation4], 0 }
   0x7   :  { %18 = vsyncpa [#allocation4 + $0x1], 0 }
   0x8   :  { %19 = vsyncpa [#allocation10], 0 }
   0x9   :  { %21 = vsyncpa [#allocation10 + $0x1], 0  ;;  %s1335_s15 = smov 0   ;;  %s1337_s16 = smov 0  }
   0xa   :  { %s1339_s17 = smov 0   ;;  %s1341_s18 = smov 0  }
   0xb   :  { %s1343_s19 = smov 0   ;;  %s1345_s20 = smov 0  }
   0xc LB: > { %1678 = sst [smem:[#allocation16_spill]] %s1282_s19  ;;  %s1366_s21 = sadd.s32 4294967295, %s1286_s20   ;;  %s1286_s20 = sphi %s1345_s20, %s27_s20   ;;  %s1282_s19 = sphi %s1343_s19, %s1697_s19   ;;  %s1278_s18 = sphi %s1341_s18, %s1696_s18   ;;  %s1274_s17 = sphi %s1339_s17, %s1700_s17   ;;  %s1270_s16 = sphi %s1337_s16, %s1699_s16   ;;  %s1266_s15 = sphi %s1335_s15, %s1698_s15  }
   0xd   : > { %s906_s22 = sadd.s32 4294967294, %s1286_s20   ;;  %p61_p0 = scmp.ne.s32.totalorder %s1270_s16, %s1266_s15 }
   0xe   : > { %p1671_p1 = scmp.eq.s32.totalorder %s1366_s21, 0  ;;  %p138_p3 = scmp.eq.s32.totalorder %s906_s22, 1 }
   0xf   : > { %p907_p5 = scmp.ge.s32.totalorder %s1286_s20, 1  ;;  %p171_p7 = scmp.lt.s32.totalorder %s1286_s20, 3 }
  0x10   : > { %p1375_p4 = por %p1671_p1, %p61_p0  ;;  %p1380_p6 = por %p138_p3, %p61_p0 }
  0x11   : > { %p1385_p8 = pnand %p907_p5, %p171_p7  ;;  %s1288_s26 = smov [#allocation7]  }
  0x12   : > { %s1679_s23 = scalar_select %p1375_p4, 1, 0 }
  0x13   : > { %s1680_s24 = scalar_select %p1380_p6, 1, 0 }
  0x14   : > { %s1681_s25 = scalar_select %p1385_p8, 1, 0 }
  0x15   : > { %s183_s27 = sshll.u32 %s1288_s26, 4  ;;  %p984_p9 = pneg %p1385_p8  ;;  %s184_s27 = int_to_ptr.vmem [resolvable:$true] %s183_s27 }
  0x16   : > { %s39_s29 = sadd.s32 1, %s1282_s19  ;;  %s1683_s2 = sld [smem:[#allocation18_spill]] }
  0x17   : > { %p1394_p11 = pnand %p984_p9, %p1671_p1 }
  0x19   : > { %p1078_p13 = pneg %p1394_p11 }
  0x1c   : > { %s1076_s6 = scalar_lea.hbm %s1683_s2, 512 }
  0x1d   : > { %p1077_p12 = scmp.ne.s32.totalorder %s1683_s2, %s1076_s6  ;;  %p1083_p5 = scmp.lt.u32.totalorder %s1076_s6, %s1683_s2 }
  0x1f   : > { %p1079_p0 = pnand %p1078_p13, %p1077_p12 }
  0x21   : > { %p1080_p3 = pneg %p1079_p0 }
  0x23   : > { %p1085_p7 = pnand %p1083_p5, %p1080_p3 }
  0x25   : > { %1088 = shalt.err (!%p1085_p7)
}
  0x26   : > { %s1089_s11 = scalar_lea.vmem %s184_s27, 512  ;;  %p1097_p2 = scmp.lt.s32.totalorder %s184_s27, %s184_s27 }
  0x27   : > { %p1090_p9 = scmp.ne.s32.totalorder %s184_s27, %s1089_s11  ;;  %p1098_p6 = scmp.lt.s32.totalorder %s1089_s11, %s1089_s11 }
  0x29   : > { %p1092_p10 = pnand %p1090_p9, %p1078_p13  ;;  %p1099_p4 = por %p1098_p6, %p1097_p2 }
  0x2b   : > { %p1093_p1 = pneg %p1092_p10 }
  0x2d   : > { %p1100_p8 = pnand %p1099_p4, %p1093_p1 }
  0x2f   : > { %1103 = shalt.err (!%p1100_p8)
}
  0x30   : > { %s1289_s12 = smov 128   ;;  %s1290_s13 = smov 8  }
  0x31   : > { %987 = dma.hbm_to_vmem [thread:$0]  (!%p1394_p11), %s1683_s2, 512, %s184_s27, [#allocation6], %s1289_s12, %s1289_s12, %s1290_s13  }
  0x32   : > { %p41_p1 = scmp.ge.s32.totalorder %s39_s29, 2  ;;  %s48_s26 = sadd.s32 1, %s1274_s17 }
  0x33   : > { %p55_p2 = scmp.ne.s32.totalorder %s1274_s17, %s1270_s16  ;;  %p56_p4 = scmp.eq.s32.totalorder %s1286_s20, 0 }
  0x34   : > { %s1702_s29 = smov (%p41_p1, %s39_s29), 0  ;;  %p1686_p8 = scmp.eq.s32.totalorder %s1366_s21, 1 }
  0x35   : > { %1684 = sst [smem:[#allocation17_spill]] %s1702_s29  ;;  %p1421_p6 = por %p56_p4, %p55_p2 }
  0x36   : > { %p1427_p10 = por %p1686_p8, %p55_p2  ;;  %s43_s5 = ssub.s32 %s1282_s19, %s1702_s29 }
  0x37   : > { %p1003_p11 = scmp.lt.s32.totalorder %s1286_s20, 2  ;;  %p46_p12 = scmp.eq.s32.totalorder %s43_s5, 0 }
  0x38   : > { %s1687_s28 = scalar_select %p1427_p10, 1, 0 }
  0x39   : > { %s197_s27 = sand.u32 1, %s1274_s17   ;;  %s911_s8 = sshll.u32 %s1282_s19, 7 }
  0x3a   : > { %s1435_s6 = sshll.u32 %s197_s27, 3  ;;  %s1444_s11 = scalar_lea.hbm %s1666_s0, %s911_s8 }
  0x3b   : > { %s1438_s7 = scalar_select %p46_p12, %s1274_s17, %s48_s26  }
  0x3c   : > { %s201_s12 = scalar_lea.vmem [#allocation2], %s1435_s6  ;;  %p1451_p13 = pnand %p1003_p11, %p1421_p6 }
  0x3d   : > { %s209_s13 = sshll.u32 %s201_s12, 4  ;;  %s1458_s5 = scalar_lea.hbm %s1667_s1, %s911_s8  ;;  %s1447_s13 = int_to_ptr.vmem [resolvable:$true] %s209_s13 }
  0x3e   : > { %s216_s9 = sand.u32 1, %s1286_s20   ;;  %s198_s10 = scalar_lea.sflag [#allocation3], %s197_s27 }
  0x3f   : > { %s1104_s2 = scalar_lea.hbm %s1444_s11, 128  ;;  %p1106_p3 = pneg %p1451_p13 }
  0x40   : > { %p1105_p0 = scmp.ne.s32.totalorder %s1444_s11, %s1104_s2  ;;  %s1109_s29 = scalar_lea.hbm %s1666_s0, 256 }
  0x41   : > { %p1110_p9 = scmp.lt.u32.totalorder %s1444_s11, %s1666_s0  ;;  %p1111_p1 = scmp.lt.u32.totalorder %s1109_s29, %s1104_s2 }
  0x42   : > { %p1107_p5 = pnand %p1106_p3, %p1105_p0  ;;  %p1113_p4 = scmp.lt.u32.totalorder %s1104_s2, %s1444_s11 }
  0x43   : > { %p1112_p2 = por %p1111_p1, %p1110_p9 }
  0x44   : > { %p1108_p7 = pneg %p1107_p5 }
  0x45   : > { %p1114_p6 = por %p1113_p4, %p1112_p2 }
  0x47   : > { %p1115_p8 = pnand %p1114_p6, %p1108_p7 }
  0x49   : > { %1118 = shalt.err (!%p1115_p8)
}
  0x4a   : > { %s1119_s27 = scalar_lea.vmem %s1447_s13, 128  ;;  %s1291_s8 = smov [#allocation2]  }
  0x4b   : > { %p1120_p11 = scmp.ne.s32.totalorder %s1447_s13, %s1119_s27  ;;  %s1124_s26 = sshll.u32 %s1291_s8, 4  ;;  %s1125_s26 = int_to_ptr.vmem [resolvable:$false] %s1124_s26 }
  0x4c   : > { %s1126_s19 = scalar_lea.vmem %s1125_s26, 256  ;;  %p1127_p5 = scmp.lt.s32.totalorder %s1447_s13, %s1125_s26 }
  0x4d   : > { %p1122_p12 = pnand %p1120_p11, %p1106_p3  ;;  %p1128_p9 = scmp.lt.s32.totalorder %s1126_s19, %s1119_s27 }
  0x4f   : > { %p1123_p0 = pneg %p1122_p12  ;;  %p1129_p1 = por %p1128_p9, %p1127_p5 }
  0x51   : > { %p1130_p2 = pnand %p1129_p1, %p1123_p0 }
  0x53   : > { %1133 = shalt.err (!%p1130_p2)
}
  0x54   : > { %991 = dma.hbm_to_vmem [thread:$0]  (!%p1451_p13), %s1444_s11, 128, %s1447_s13, %s198_s10  }
  0x55   : > { %s220_s2 = scalar_lea.vmem [#allocation5], %s1435_s6  ;;  %s217_s30 = scalar_lea.sflag [#allocation6], %s216_s9 }
  0x56   : > { %s227_s29 = sshll.u32 %s220_s2, 4  ;;  %s1134_s12 = scalar_lea.hbm %s1458_s5, 128  ;;  %s228_s29 = int_to_ptr.vmem [resolvable:$true] %s227_s29 }
  0x57   : > { %p1135_p7 = scmp.ne.s32.totalorder %s1458_s5, %s1134_s12  ;;  %s1139_s8 = scalar_lea.hbm %s1667_s1, 256 }
  0x58   : > { %p1140_p8 = scmp.lt.u32.totalorder %s1458_s5, %s1667_s1  ;;  %p1141_p11 = scmp.lt.u32.totalorder %s1139_s8, %s1134_s12 }
  0x59   : > { %p1137_p4 = pnand %p1135_p7, %p1106_p3  ;;  %p1143_p0 = scmp.lt.u32.totalorder %s1134_s12, %s1458_s5 }
  0x5a   : > { %p1142_p12 = por %p1141_p11, %p1140_p8 }
  0x5b   : > { %p1138_p6 = pneg %p1137_p4 }
  0x5c   : > { %p1144_p5 = por %p1143_p0, %p1142_p12 }
  0x5e   : > { %p1145_p9 = pnand %p1144_p5, %p1138_p6 }
  0x60   : > { %1148 = shalt.err (!%p1145_p9)
}
  0x61   : > { %s1149_s6 = scalar_lea.vmem %s228_s29, 128  ;;  %s1292_s11 = smov [#allocation5]  }
  0x62   : > { %p1150_p1 = scmp.ne.s32.totalorder %s228_s29, %s1149_s6  ;;  %s1154_s13 = sshll.u32 %s1292_s11, 4  ;;  %s1155_s13 = int_to_ptr.vmem [resolvable:$false] %s1154_s13 }
  0x63   : > { %s1156_s9 = scalar_lea.vmem %s1155_s13, 256  ;;  %p1157_p4 = scmp.lt.s32.totalorder %s228_s29, %s1155_s13 }
  0x64   : > { %p1152_p2 = pnand %p1150_p1, %p1106_p3  ;;  %p1158_p10 = scmp.lt.s32.totalorder %s1156_s9, %s1149_s6 }
  0x66   : > { %p1153_p7 = pneg %p1152_p2  ;;  %p1159_p8 = por %p1158_p10, %p1157_p4 }
  0x68   : > { %p1160_p11 = pnand %p1159_p8, %p1153_p7 }
  0x6a   : > { %1163 = shalt.err (!%p1160_p11)
}
  0x6b   : > { %994 = dma.hbm_to_vmem [thread:$0]  (!%p1451_p13), %s1458_s5, 128, %s228_s29, %s217_s30  }
  0x6c   : > { %p1689_p6 = scmp.ne.s32.totalorder %s1681_s25, 0 }
  0x6d   : > { %s1511_s10 = sand.u32 (!%p1689_p6), 1, %s1270_s16   ;;  %p1690_p10 = scmp.ne.s32.totalorder (!%p1689_p6), %s1679_s23, 0 }
  0x6e   : > { %236 = sbr.rel (%p1689_p6) target bundleno = 1274 (0x4fa), region = 32  ;;  %s915_s2 = sshll.u32 (!%p1689_p6), %s1511_s10, 3 }
  0x6f   : > { %s239_s12 = scalar_lea.sflag (!%p1689_p6), [#allocation3], %s1511_s10  ;;  %s1515_s22 = scalar_lea.vmem (!%p1689_p6), [#allocation2], %s915_s2 }
  0x75   : > { %1245 = dma.done.wait (%p1690_p10), %s239_s12, 128  }
  0x76   : > { %1247 = vsyncadd (%p1690_p10), %s239_s12, 4294967168  ;;  %s247_s14 = sand.u32 1, %s1366_s21   ;;  %s251_s5 = scalar_lea.vmem [#allocation5], %s915_s2 }
  0x77   : > { %s248_s25 = scalar_lea.sflag [#allocation6], %s247_s14 }
  0x78   : > { %1249 = dma.done.wait (%p1690_p10), %s248_s25, 128  }
  0x79   : > { %1251 = vsyncadd (%p1690_p10), %s248_s25, 4294967168  ;;  %p1691_p13 = scmp.eq.s32.totalorder %s1366_s21, 0 }
  0x7b   : > { %1253 = dma.done.wait (%p1691_p13), [#allocation6], 512   ;;  %p1692_p3 = pmov %p1691_p13 }
  0x7c   : > { %v1293_v0 = vmov 0.0|0.0   ;;  %vm1294_vm0 = vmmov 0   ;;  %v1295_v1 = vmov 0.0   ;;  %vm295_vm1 = vcmask 261120   ;;  %v291_v2 = vld [vmem:[#allocation7] sm:$0xff]  ;;  %v292_v3 = vld [vmem:[#allocation7 + $0x8] sm:$0xff] }
  0x7d   : > { %1255 = vsyncadd (%p1692_p3), [#allocation6], 4294966784  ;;  %964 = vmatprep.subr.bf16.mxu0 %v1293_v0  ;;  %951 = vmatprep.mubr.msk.f32.mxu0 %vm1294_vm0, %v1295_v1  ;;  %v965_v4 = vpack.c.bf16 %v292_v3, %v291_v2  ;;  %v290_v5 = vld [vmem:[%s251_s5] sm:$0xff]  ;;  %v289_v9 = vld [vmem:[%s1515_s22] sm:$0xff]  ;;  %vm457_vm3 = vcmask 64512   ;;  %v546_v23 = vlaneseq  ;;  %s1298_s21 = smov 8  }
  0x7e   : > { %954 = vmatprep.subr.mxu1 %v1295_v1  ;;  %956 = vmatprep.mubr.msk.f32.mxu1 %vm1294_vm0, %v1295_v1  ;;  %vm966_vm2 = vmpackc.low %vm295_vm1, %vm295_vm1  ;;  %v293_v6 = vld [vmem:[#allocation7 + $0x10] sm:$0xff]  ;;  %v294_v7 = vld [vmem:[#allocation7 + $0x18] sm:$0xff]  ;;  %v1296_v21 = vmov 1983009808   ;;  %v1297_v24 = vmov 1934713408  }
  0x7f   : > { %955 = vmatpush3.xpose.msk.msra.mxu1 %vm295_vm1, %v290_v5  ;;  %967 = vmatpush3.bf16.xpose.msk.msra.mxu0 %vm966_vm2, %v965_v4  ;;  %v969_v8 = vpack.c.bf16 %v294_v7, %v293_v6  ;;  %v544_v22 = vunpack.c.l.s4 %v1296_v21  ;;  %v559_v25 = vunpack.c.l.s4 %v1297_v24  ;;  %v1547_v27 = vshrl.u32 %v546_v23, 7  ;;  %s1299_s23 = smov 16   ;;  %s1300_s29 = smov 24  }
  0x80   : > { %959 = vmatprep.subr.mxu1 %v1295_v1  ;;  %968 = vmatprep.subr.bf16.mxu0 %v1293_v0  ;;  %s1301_s30 = smov 32   ;;  %s1302_s27 = smov 64   ;;  %v1307_v4 = vmov 1966171168   ;;  %vm616_vm4 = vcmask 523264   ;;  %vm618_vm5 = vcmask 785408  }
  0x81   : > { %v545_v26 = vunpack.c.0.s8 %v544_v22  ;;  %v560_v28 = vunpack.c.0.s8 %v559_v25  ;;  %s1303_s8 = smov 48   ;;  %s1304_s26 = smov 96   ;;  %vm724_vm6 = vcmask 130048   ;;  %vm726_vm7 = vcmask 195584  }
  0x82   : > { %s1305_s19 = smov 40   ;;  %s1306_s6 = smov 56   ;;  %vm729_vm8 = vcmask 326656   ;;  %vm731_vm9 = vcmask 392192   ;;  %vm643_vm10 = vcmp.lt.s32.totalorder %v546_v23, 256  ;;  %vm733_vm11 = vcmask 457728  }
  0x83   : > { %v548_v29 = vsub.s32 %v545_v26, %v1547_v27  ;;  %v563_v32 = vsub.s32 %v560_v28, %v1547_v27  ;;  %s918_s11 = sshll.u32 %s1511_s10, 1  ;;  %s933_s13 = sshll.u32 %s1278_s18, 5  ;;  %vm735_vm12 = vcmask 516096  }
  0x84   : > { %s282_s9 = scalar_lea.vmem [#allocation8], %s918_s11  ;;  %s930_s12 = sshll.u32 %s1278_s18, 4 }
  0x85   : > { %s756_s2 = sshll.u32 %s282_s9, 4  ;;  %s288_s22 = scalar_lea.vmem [#allocation9], %s1511_s10  ;;  %s1587_s2 = int_to_ptr.vmem [resolvable:$true] %s756_s2 }
  0x86   : > { %s769_s14 = sshll.u32 %s288_s22, 4  ;;  %p1693_p0 = scmp.ne.s32.totalorder %s1687_s28, 0  ;;  %s1594_s14 = int_to_ptr.vmem [resolvable:$true] %s769_s14 }
  0x87   : > { %971 = vmatpush3.bf16.xpose.msk.msra.mxu0 %vm966_vm2, %v969_v8 }
  0x8e   : > { %952 = vmatmul.mubr.msk.f32.vlgmr.msra.gmra.mrb[0].mxu0 %vm295_vm1, %v289_v9 }
 0x161   : > { %v377_v10 = vpop.f32.mrb[0].mxu0 }
 0x162   : > { %v953_v11 = vpop.f32.mrb[1].mxu0  ;;  %957 = vmatmul.mubr.msk.f32.vlgmr.msra.gmra.mrb[0].mxu1 %vm295_vm1, %v377_v10 }
 0x163   : > { %960 = vmatpush3.msra.mxu1 %v290_v5  ;;  %961 = vmatprep.mubr.msk.f32.mxu1 %vm1294_vm0, %v1295_v1  ;;  %v627_v5 = vunpack.c.l.s4 %v1307_v4 }
 0x165   : > { %v628_v8 = vunpack.c.0.s8 %v627_v5 }
 0x235   : > { %v453_v12 = vpop.f32.mrb[0].mxu1 }
 0x236   : > { %v958_v13 = vpop.f32.mrb[1].mxu1  ;;  %v458_v14 = vsel %vm457_vm3, %v453_v12, -inf }
 0x237   : > { %459 = vmax.xlane.f32.xlu0 %v458_v14 }
 0x2c4   : > { %v460_v15 = vpop.xlane.xlu0 %459 }
 0x2c5   : > { %v461_v16 = vsub.f32 %v453_v12, %v460_v15  ;;  %v631_v12 = vsub.s32 %v628_v8, %v1547_v27 }
 0x2c7   : > { %v462_v17 = vmul.f32 1.442695, %v461_v16 }
 0x2c9   : > { %1072 = vpow2.f32 %v462_v17 }
 0x2d3   : > { %v1073_v18 = vpop.eup %1072 }
 0x2d4   : > { %v464_v19 = vsel %vm457_vm3, %v1073_v18, 0.0 }
 0x2d5   : > { %465 = vadd.xlane.f32.xlu0 %v464_v19 }
 0x362   : > { %v466_v20 = vpop.xlane.xlu0 %465 }
 0x363   : > { %1074 = vrcp.f32 %v466_v20 }
 0x36d   : > { %v1075_v30 = vpop.eup %1074 }
 0x36e   : > { %v468_v31 = vmul.f32 %v1075_v30, %v1073_v18 }
 0x370   : > { %962 = vmatmul.mubr.msk.f32.vlgmr.msra.gmra.mrb[2].mxu1 %vm457_vm3, %v468_v31  ;;  %v653_v33 = vrot.slane %v468_v31, %v548_v29  ;;  %v646_v43 = vcombine.high %v468_v31, %v1295_v1 }
 0x372   : > { %v1552_v34 = vrot.slane %v653_v33, %v563_v32  ;;  %v661_v36 = vcombine.high %v653_v33, %v1295_v1  ;;  %v660_v50 = vrot.slane %v646_v43, %v548_v29 }
 0x374   : > { %v691_v35 = vcombine.high %v1552_v34, %v1295_v1  ;;  %v675_v37 = vrot.slane %v661_v36, %v563_v32  ;;  %v683_v52 = vrot.slane %v660_v50, %v563_v32  ;;  %v676_v54 = vcombine.high %v660_v50, %v1295_v1 }
 0x376   : > { %696 = vrot.lane.b32.xlu1 %v691_v35, %s1298_s21  ;;  %v692_v38 = vcombine.high %v675_v37, %v1295_v1  ;;  %v690_v55 = vrot.slane %v676_v54, %v563_v32  ;;  %v693_v59 = vcombine.high %v683_v52, %v1295_v1  ;;  %s1585_s21 = scalar_lea.hbm %s1669_s3, %s933_s13 }
 0x378   : > { %v694_v60 = vcombine.high %v690_v55, %v1295_v1 }
 0x37a   : > { %700 = vrot.lane.b32.xlu1 %v675_v37, %s1299_s23 }
 0x37e   : > { %704 = vrot.lane.b32.xlu1 %v692_v38, %s1300_s29  ;;  %s1592_s29 = scalar_lea.hbm %s1670_s4, %s930_s12 }
 0x3e8   : > { %v697_v61 = vpop.permute.xlu1 %696 }
 0x3e9   : > { %v723_v14 = vsel %vm457_vm3, %v1552_v34, %v697_v61 }
 0x3ec   : > { %v701_v62 = vpop.permute.xlu1 %700 }
 0x3ed   : > { %v725_v18 = vsel %vm724_vm6, %v723_v14, %v701_v62 }
 0x3f0   : > { %v705_v63 = vpop.permute.xlu1 %704 }
 0x3f1   : > { %v727_v20 = vsel %vm726_vm7, %v725_v18, %v705_v63 }
 0x443   : > { %v538_v39 = vpop.f32.mrb[2].mxu1 }
 0x444   : > { %v542_v40 = vcombine.high %v538_v39, %v1295_v1  ;;  %v549_v41 = vrot.slane %v538_v39, %v548_v29  ;;  %v963_v42 = vpop.f32.mrb[3].mxu1 }
 0x446   : > { %v556_v44 = vrot.slane %v542_v40, %v548_v29  ;;  %v557_v45 = vcombine.high %v549_v41, %v1295_v1  ;;  %v564_v46 = vrot.slane %v549_v41, %v563_v32 }
 0x448   : > { %v579_v47 = vrot.slane %v556_v44, %v563_v32  ;;  %v587_v48 = vcombine.high %v564_v46, %v1295_v1  ;;  %v571_v49 = vrot.slane %v557_v45, %v563_v32  ;;  %v572_v51 = vcombine.high %v556_v44, %v1295_v1 }
 0x44a   : > { %592 = vrot.lane.b32.xlu1 %v587_v48, %s1301_s30  ;;  %596 = vrot.lane.b32.xlu0 %v571_v49, %s1302_s27  ;;  %v589_v53 = vcombine.high %v579_v47, %v1295_v1  ;;  %v586_v56 = vrot.slane %v572_v51, %v563_v32  ;;  %v588_v57 = vcombine.high %v571_v49, %v1295_v1 }
 0x44c   : > { %v590_v58 = vcombine.high %v586_v56, %v1295_v1 }
 0x44e   : > { %708 = vrot.lane.b32.xlu0 %v683_v52, %s1301_s30  ;;  %604 = vrot.lane.b32.xlu1 %v589_v53, %s1301_s30  ;;  %s738_s30 = scalar_lea.sflag [#allocation4], %s1511_s10 }
 0x452   : > { %716 = vrot.lane.b32.xlu0 %v690_v55, %s1303_s8  ;;  %608 = vrot.lane.b32.xlu1 %v586_v56, %s1302_s27  ;;  %s1164_s27 = scalar_lea.vmem %s1587_s2, 32  ;;  %s1308_s8 = smov [#allocation8]  }
 0x453   : > { %p1165_p12 = scmp.ne.s32.totalorder %s1587_s2, %s1164_s27 }
 0x455   : > { %p1166_p5 = pnand %p1165_p12, %p1693_p0 }
 0x456   : > { %600 = vrot.lane.b32.xlu1 %v588_v57, %s1304_s26 }
 0x457   : > { %p1167_p9 = pneg %p1166_p5 }
 0x45a   : > { %612 = vrot.lane.b32.xlu1 %v590_v58, %s1304_s26  ;;  %s1168_s26 = sshll.u32 %s1308_s8, 4  ;;  %s1169_s26 = int_to_ptr.vmem [resolvable:$false] %s1168_s26 }
 0x45b   : > { %p1171_p1 = scmp.lt.s32.totalorder %s1587_s2, %s1169_s26 }
 0x45e   : > { %712 = vrot.lane.b32.xlu1 %v693_v59, %s1305_s19  ;;  %s1170_s19 = scalar_lea.vmem %s1169_s26, 64 }
 0x45f   : > { %p1172_p2 = scmp.lt.s32.totalorder %s1170_s19, %s1164_s27 }
 0x461   : > { %p1173_p7 = por %p1172_p2, %p1171_p1 }
 0x462   : > { %720 = vrot.lane.b32.xlu1 %v694_v60, %s1306_s6 }
 0x463   : > { %p1174_p4 = pnand %p1173_p7, %p1167_p9 }
 0x4bc   : > { %v593_v0 = vpop.permute.xlu1 %592  ;;  %v597_v6 = vpop.permute.xlu0 %596 }
 0x4bd   : > { %v615_v9 = vsel %vm295_vm1, %v564_v46, %v593_v0 }
 0x4be   : > { %v617_v10 = vsel %vm616_vm4, %v615_v9, %v597_v6 }
 0x4c0   : > { %v605_v2 = vpop.permute.xlu1 %604  ;;  %v709_v15 = vpop.permute.xlu0 %708 }
 0x4c1   : > { %v620_v1 = vsel %vm295_vm1, %v579_v47, %v605_v2  ;;  %v728_v21 = vsel %vm295_vm1, %v727_v20, %v709_v15 }
 0x4c4   : > { %v609_v3 = vpop.permute.xlu1 %608  ;;  %v717_v27 = vpop.permute.xlu0 %716 }
 0x4c5   : > { %v621_v11 = vsel %vm616_vm4, %v620_v1, %v609_v3 }
 0x4c8   : > { %v601_v7 = vpop.permute.xlu1 %600 }
 0x4c9   : > { %v619_v16 = vsel %vm618_vm5, %v617_v10, %v601_v7 }
 0x4cc   : > { %v613_v13 = vpop.permute.xlu1 %612 }
 0x4cd   : > { %v622_v17 = vsel %vm618_vm5, %v621_v11, %v613_v13 }
 0x4ce   : > { %v625_v19 = vcombine.low %v619_v16, %v622_v17 }
 0x4d0   : > { %v632_v22 = vrot.slane %v625_v19, %v631_v12  ;;  %v713_v24 = vpop.permute.xlu1 %712 }
 0x4d1   : > { %v730_v25 = vsel %vm729_vm8, %v728_v21, %v713_v24 }
 0x4d2   : > { %v639_v26 = vrot.slane %v632_v22, %v631_v12  ;;  %v732_v23 = vsel %vm731_vm9, %v730_v25, %v717_v27 }
 0x4d4   : > { %v721_v28 = vpop.permute.xlu1 %720  ;;  %645 = vst.msk [vmem:[%s282_s9] sm:$0x3] %vm643_vm10, %v639_v26 }
 0x4d5   : > { %v734_v29 = vsel %vm733_vm11, %v732_v23, %v721_v28 }
 0x4d6   : > { %1177 = shalt.err (!%p1174_p4)
}
 0x4d7   : > { %s1178_s6 = scalar_lea.hbm %s1585_s21, 32  ;;  %s1182_s9 = scalar_lea.hbm %s1669_s3, 64 }
 0x4d8   : > { %p1179_p8 = scmp.ne.s32.totalorder %s1585_s21, %s1178_s6  ;;  %p1183_p10 = scmp.lt.u32.totalorder %s1585_s21, %s1669_s3 }
 0x4d9   : > { %p1184_p13 = scmp.lt.u32.totalorder %s1182_s9, %s1178_s6  ;;  %p1186_p12 = scmp.lt.u32.totalorder %s1178_s6, %s1585_s21 }
 0x4da   : > { %p1180_p11 = pnand %p1179_p8, %p1693_p0 }
 0x4db   : > { %p1185_p3 = por %p1184_p13, %p1183_p10 }
 0x4dc   : > { %p1181_p6 = pneg %p1180_p11 }
 0x4dd   : > { %p1187_p5 = por %p1186_p12, %p1185_p3 }
 0x4df   : > { %p1188_p9 = pnand %p1187_p5, %p1181_p6 }
 0x4e1   : > { %1191 = shalt.err (!%p1188_p9)
}
 0x4e2   : > { %980 = dma.vmem_to_hbm [thread:$0]  (%p1693_p0), %s1587_s2, 32, %s1585_s21, %s738_s30   ;;  %736 = vst.msk [vmem:[%s288_s22] sm:$0x1] %vm735_vm12, %v734_v29 }
 0x4e3   : > { %s743_s5 = scalar_lea.sflag [#allocation10], %s1511_s10  ;;  %s1192_s18 = scalar_lea.vmem %s1594_s14, 16 }
 0x4e4   : > { %p1193_p1 = scmp.ne.s32.totalorder %s1594_s14, %s1192_s18  ;;  %s1309_s23 = smov [#allocation9]  }
 0x4e5   : > { %s1196_s27 = sshll.u32 %s1309_s23, 4  ;;  %s1197_s27 = int_to_ptr.vmem [resolvable:$false] %s1196_s27 }
 0x4e6   : > { %p1194_p2 = pnand %p1193_p1, %p1693_p0  ;;  %s1198_s8 = scalar_lea.vmem %s1197_s27, 32 }
 0x4e7   : > { %p1199_p4 = scmp.lt.s32.totalorder %s1594_s14, %s1197_s27  ;;  %p1200_p8 = scmp.lt.s32.totalorder %s1198_s8, %s1192_s18 }
 0x4e8   : > { %p1195_p7 = pneg %p1194_p2 }
 0x4e9   : > { %p1201_p11 = por %p1200_p8, %p1199_p4 }
 0x4eb   : > { %p1202_p6 = pnand %p1201_p11, %p1195_p7 }
 0x4ed   : > { %1205 = shalt.err (!%p1202_p6)
}
 0x4ee   : > { %s1206_s10 = scalar_lea.hbm %s1592_s29, 16  ;;  %s1210_s21 = scalar_lea.hbm %s1670_s4, 32 }
 0x4ef   : > { %p1207_p10 = scmp.ne.s32.totalorder %s1592_s29, %s1206_s10  ;;  %p1211_p12 = scmp.lt.u32.totalorder %s1592_s29, %s1670_s4 }
 0x4f0   : > { %p1212_p5 = scmp.lt.u32.totalorder %s1210_s21, %s1206_s10  ;;  %p1214_p1 = scmp.lt.u32.totalorder %s1206_s10, %s1592_s29 }
 0x4f1   : > { %p1208_p13 = pnand %p1207_p10, %p1693_p0 }
 0x4f2   : > { %p1213_p9 = por %p1212_p5, %p1211_p12 }
 0x4f3   : > { %p1209_p3 = pneg %p1208_p13 }
 0x4f4   : > { %p1215_p2 = por %p1214_p1, %p1213_p9 }
 0x4f6   : > { %p1216_p7 = pnand %p1215_p2, %p1209_p3 }
 0x4f8   : > { %1219 = shalt.err (!%p1216_p7)
}
 0x4f9   : > { %981 = dma.vmem_to_hbm [thread:$0]  (%p1693_p0), %s1594_s14, 16, %s1592_s29, %s743_s5  }
 0x4fa PF: > { %s781_s19 = sand.u32 1, %s1266_s15   ;;  %p1694_p4 = scmp.ne.s32.totalorder %s1680_s24, 0 }
 0x4fb   : > { %p1695_p8 = scmp.ge.s32.totalorder %s1286_s20, 2  ;;  %s782_s6 = scalar_lea.sflag [#allocation4], %s781_s19 }
 0x4fd   : > { %p996_p11 = pnand %p1695_p8, %p1694_p4 }
 0x4ff   : > { %1257 = dma.done.wait (!%p996_p11), %s782_s6, 32  }
 0x500   : > { %1259 = vsyncadd (!%p996_p11), %s782_s6, 4294967264  ;;  %s791_s11 = scalar_lea.sflag [#allocation10], %s781_s19 }
 0x501   : > { %1261 = dma.done.wait (!%p996_p11), %s791_s11, 16  }
 0x502   : > { %1263 = vsyncadd (!%p996_p11), %s791_s11, 4294967280  ;;  %s27_s20 = sadd.s32 1, %s1286_s20   ;;  %s1696_s18 = sld [smem:[#allocation16_spill]] }
 0x503   : > { %p24_p6 = scmp.ge.s32.totalorder %s27_s20, 4   ;;  %s1697_s19 = sld [smem:[#allocation17_spill]] }
 0x504   : > { %s1698_s15 = smov %s1270_s16  ;;  %s1699_s16 = smov %s1274_s17 }
 0x505   : > { %s1700_s17 = smov %s1438_s7  ;;  %26 = sbr.rel (!%p24_p6) target bundleno = 12 (0xc), region = 111 }
 0x50c   :  { %795 = vsyncpa [#allocation3], 1 }
 0x50d   :  { %797 = vsyncpa [#allocation3 + $0x1], 1 }
 0x50e   :  { %798 = vsyncpa [#allocation6], 1 }
 0x50f   :  { %800 = vsyncpa [#allocation6 + $0x1], 1 }
 0x510   :  { %801 = vsyncpa [#allocation4], 1 }
 0x511   :  { %803 = vsyncpa [#allocation4 + $0x1], 1 }
 0x512   :  { %804 = vsyncpa [#allocation10], 1 }
 0x513   :  { %806 = vsyncpa [#allocation10 + $0x1], 1 }

</bundles_post_ra>
